<compile_context>
chip_gen: v7x
topology: tpu7x:2x2x1
jax: 0.10.0
libtpu: 0.0.40
codegen_flags: <defaults>
</compile_context>

<pallas_src>
import functools

import jax
import jax.numpy as jnp
from jax.experimental import pallas as pl
from jax.experimental.pallas import tpu as pltpu


def _round_up(n: int, m: int) -> int:
    return ((n + m - 1) // m) * m


# ----------------------------------------------------------------------------
# Kernels
# ----------------------------------------------------------------------------
def _ffn_resident_kernel(x_ref, w1_ref, b1_ref, w2_ref, b2_ref, o_ref, acc_ref,
                         *, th, n_chunks, compute_dtype):
    """Grid: (token_tiles,). Full W1/W2 are VMEM-resident (constant index maps).

    x_ref : (tm, Dp)   token tile
    w1_ref: (Dp, Hp)   full first weight (resident)
    b1_ref: (1, Hp)    full first bias
    w2_ref: (Hp, Dp)   full second weight (resident)
    b2_ref: (1, Dp)    second bias
    acc_ref: (tm, Dp)  f32 accumulator scratch
    """
    acc_ref[...] = jnp.zeros_like(acc_ref)

    def body(c, carry):
        start = pl.multiple_of(c * th, th)
        x = x_ref[...].astype(compute_dtype)

        # Linear 1 (MXU) on a th-wide hidden chunk, f32 accumulation.
        w1c = w1_ref[:, pl.ds(start, th)]
        h = jnp.dot(x, w1c, preferred_element_type=jnp.float32)
        h = h + b1_ref[:, pl.ds(start, th)].astype(jnp.float32)

        # Swish in f32 (sigmoid on the EUP).
        h = h * jax.nn.sigmoid(h)

        # Linear 2 (MXU): accumulate partial products over hidden chunks.
        w2c = w2_ref[pl.ds(start, th), :]
        acc_ref[...] += jnp.dot(h.astype(compute_dtype), w2c,
                                preferred_element_type=jnp.float32)
        return carry

    jax.lax.fori_loop(0, n_chunks, body, 0, unroll=(n_chunks <= 8))

    o_ref[...] = (acc_ref[...] + b2_ref[...].astype(jnp.float32)
                  ).astype(o_ref.dtype)


def _ffn_stream_kernel(x_ref, w1_ref, b1_ref, w2_ref, b2_ref, o_ref, acc_ref,
                       *, compute_dtype):
    """Grid: (token_tiles, hidden_tiles). Weights streamed in hidden chunks."""
    h_idx = pl.program_id(1)

    @pl.when(h_idx == 0)
    def _():
        acc_ref[...] = jnp.zeros_like(acc_ref)

    x = x_ref[...].astype(compute_dtype)
    h = jnp.dot(x, w1_ref[...], preferred_element_type=jnp.float32)
    h = h + b1_ref[...].astype(jnp.float32)
    h = h * jax.nn.sigmoid(h)
    acc_ref[...] += jnp.dot(h.astype(compute_dtype), w2_ref[...],
                            preferred_element_type=jnp.float32)

    @pl.when(h_idx == pl.num_programs(1) - 1)
    def _():
        o_ref[...] = (acc_ref[...] + b2_ref[...].astype(jnp.float32)
                      ).astype(o_ref.dtype)


# ----------------------------------------------------------------------------
# Wrapper
# ----------------------------------------------------------------------------
def make_feed_forward(w1, b1, w2, b2, *, tm=512, th=512, use_bf16_matmul=False):
    """Build a fused FFN forward fn.  Weights are (in_features, out_features),
    i.e. y = x @ W + b (equivalent to PyTorch's x @ W.T with W of shape
    (out, in)).  Weight padding is done once here, not per call."""
    D, H = w1.shape
    assert w2.shape == (H, D) and b1.shape == (H,) and b2.shape == (D,)

    compute_dtype = jnp.dtype(jnp.bfloat16) if use_bf16_matmul else jnp.dtype(w1.dtype)
    wbytes = compute_dtype.itemsize

    # Lane/sublane friendly padded sizes; th must divide Hp for the in-kernel loop.
    Dp = _round_up(D, 128)
    th = _round_up(min(th, _round_up(H, 128)), 128)
    Hp = _round_up(H, th)
    n_chunks = Hp // th

    # Pad weights/biases once (hoisted out of the per-call hot path).
    # Zero padding is exactly neutral: padded hidden columns give h=0,
    # swish(0)=0, contribute 0; padded output columns are sliced off.
    w1p = jnp.pad(w1, ((0, Dp - D), (0, Hp - H))).astype(compute_dtype)
    w2p = jnp.pad(w2, ((0, Hp - H), (0, Dp - D))).astype(compute_dtype)
    b1p = jnp.pad(b1, (0, Hp - H)).reshape(1, Hp)
    b2p = jnp.pad(b2, (0, Dp - D)).reshape(1, Dp)

    # Generation-aware VMEM budget: ~48 MiB on v7x (64 MiB), ~100 MiB on
    # v5e/v6e (128 MiB).
    MiB = 1024 * 1024
    try:
        vmem_cap = int(pltpu.get_tpu_info().vmem_capacity_bytes)
    except Exception:
        vmem_cap = 64 * MiB  # conservative (v7x)
    vmem_limit = max(32 * MiB, min(int(vmem_cap * 0.80), vmem_cap - 16 * MiB))

    def forward(x):
        B, S, Dx = x.shape
        assert Dx == D
        N = B * S
        xbytes = jnp.dtype(x.dtype).itemsize

        # Row tile: clamp to the dtype's sublane packing and prefer >= 2
        # token tiles so v7x's two TensorCores both get work.
        pack = 16 if x.dtype == jnp.bfloat16 else (32 if xbytes == 1 else 8)
        tm_ = min(tm, _round_up(N, pack))
        if _round_up(N, tm_) // tm_ < 2 and N >= 2 * pack:
            tm_ = _round_up(-(-N // 2), pack)
        Np = _round_up(N, tm_)

        x2 = x.reshape(N, D)
        if Np != N or Dp != D:
            x2 = jnp.pad(x2, ((0, Np - N), (0, Dp - D)))

        # Resident-weights feasibility (x2 for double buffering of the
        # grid-streamed operands; weights counted x2 to stay conservative).
        resident_bytes = (2 * 2 * Dp * Hp * wbytes            # W1 + W2
                          + 2 * 2 * tm_ * Dp * xbytes         # x tile + out tile
                          + tm_ * Dp * 4                      # f32 accumulator
                          + tm_ * th * 4                      # swish chunk
                          + 2 * (Hp + Dp) * 4)                # biases
        use_resident = resident_bytes <= int(0.8 * vmem_limit)

        if use_resident:
            kernel = functools.partial(
                _ffn_resident_kernel, th=th, n_chunks=n_chunks,
                compute_dtype=compute_dtype)
            out = pl.pallas_call(
                kernel,
                out_shape=jax.ShapeDtypeStruct((Np, Dp), x.dtype),
                grid_spec=pltpu.PrefetchScalarGridSpec(
                    num_scalar_prefetch=0,
                    grid=(Np // tm_,),
                    in_specs=[
                        pl.BlockSpec((tm_, Dp), lambda i: (i, 0)),  # x tile
                        pl.BlockSpec((Dp, Hp), lambda i: (0, 0)),   # W1 (resident)
                        pl.BlockSpec((1, Hp), lambda i: (0, 0)),    # b1
                        pl.BlockSpec((Hp, Dp), lambda i: (0, 0)),   # W2 (resident)
                        pl.BlockSpec((1, Dp), lambda i: (0, 0)),    # b2
                    ],
                    out_specs=pl.BlockSpec((tm_, Dp), lambda i: (i, 0)),
                    scratch_shapes=[pltpu.VMEM((tm_, Dp), jnp.float32)],
                ),
                compiler_params=pltpu.CompilerParams(
                    dimension_semantics=("parallel",),
                    vmem_limit_bytes=vmem_limit,
                ),
            )(x2, w1p, b1p, w2p, b2p)
        else:
            # Streaming fallback: hidden axis is the (innermost) reduction
            # axis; large tm keeps weight-traffic intensity high and
            # Buffered(3) hides the chunk-DMA latency.
            kernel = functools.partial(_ffn_stream_kernel,
                                       compute_dtype=compute_dtype)
            out = pl.pallas_call(
                kernel,
                out_shape=jax.ShapeDtypeStruct((Np, Dp), x.dtype),
                grid_spec=pltpu.PrefetchScalarGridSpec(
                    num_scalar_prefetch=0,
                    grid=(Np // tm_, Hp // th),
                    in_specs=[
                        pl.BlockSpec((tm_, Dp), lambda i, h: (i, 0)),
                        pl.BlockSpec((Dp, th), lambda i, h: (0, h),
                                     pipeline_mode=pl.Buffered(3)),
                        pl.BlockSpec((1, th), lambda i, h: (0, h)),
                        pl.BlockSpec((th, Dp), lambda i, h: (h, 0),
                                     pipeline_mode=pl.Buffered(3)),
                        pl.BlockSpec((1, Dp), lambda i, h: (0, 0)),
                    ],
                    out_specs=pl.BlockSpec((tm_, Dp), lambda i, h: (i, 0)),
                    scratch_shapes=[pltpu.VMEM((tm_, Dp), jnp.float32)],
                ),
                compiler_params=pltpu.CompilerParams(
                    dimension_semantics=("parallel", "arbitrary"),
                    vmem_limit_bytes=vmem_limit,
                ),
            )(x2, w1p, b1p, w2p, b2p)

        if Np != N or Dp != D:
            out = out[:N, :D]
        return out.reshape(B, S, D)

    return forward


def reference_ffn(x, w1, b1, w2, b2):
    h = jnp.dot(x, w1) + b1
    h = h * jax.nn.sigmoid(h)
    return jnp.dot(h, w2) + b2


if __name__ == "__main__":
    # Small shapes consistent with the module: (batch, seq, dim), expansion=4.
    B, S, D, EXP = 2, 8, 32, 4
    H = D * EXP  # 128

    key = jax.random.PRNGKey(0)
    kx, k1, k2, k3, k4 = jax.random.split(key, 5)

    x = jax.random.normal(kx, (B, S, D), dtype=jnp.float32)

    # Deterministic Linear init (uniform +-1/sqrt(fan_in), like PyTorch default bounds)
    bound1 = 1.0 / (D ** 0.5)
    bound2 = 1.0 / (H ** 0.5)
    w1 = jax.random.uniform(k1, (D, H), jnp.float32, -bound1, bound1)
    b1 = jax.random.uniform(k2, (H,), jnp.float32, -bound1, bound1)
    w2 = jax.random.uniform(k3, (H, D), jnp.float32, -bound2, bound2)
    b2 = jax.random.uniform(k4, (D,), jnp.float32, -bound2, bound2)

    ffn = make_feed_forward(w1, b1, w2, b2)   # weights padded once here
    y = ffn(x)
    y = jax.block_until_ready(y)

    y_ref = reference_ffn(x, w1, b1, w2, b2)
    assert y.shape == (B, S, D)
    assert jnp.allclose(y, y_ref, atol=1e-5, rtol=1e-5), "mismatch vs reference"

    print("KERNEL_OK")
</pallas_src>

<mosaic_0001>
module attributes {stable_mosaic.version = 11 : i64} {
  func.func @_ffn_resident_kernel(%arg0: i32, %arg1: memref<8x128xf32, #tpu.memory_space<vmem>>, %arg2: memref<128x128xf32, #tpu.memory_space<vmem>>, %arg3: memref<1x128xf32, #tpu.memory_space<vmem>>, %arg4: memref<128x128xf32, #tpu.memory_space<vmem>>, %arg5: memref<1x128xf32, #tpu.memory_space<vmem>>, %arg6: memref<8x128xf32, #tpu.memory_space<vmem>>, %arg7: memref<8x128xf32, #tpu.memory_space<vmem>>) attributes {dimension_semantics = [#tpu.dimension_semantics<parallel>], iteration_bounds = array<i64: 2>, scalar_prefetch = 0 : i64, scratch_operands = 1 : i64, tpu.core_type = #tpu.core_type<tc>, window_params = [{transform_indices = @transform_0, window_bounds = array<i64: 8, 128>}, {pipeline_mode = #tpu.pipeline_mode<synchronous>, transform_indices = @transform_1, window_bounds = array<i64: 128, 128>}, {pipeline_mode = #tpu.pipeline_mode<synchronous>, transform_indices = @transform_2, window_bounds = array<i64: 1, 128>}, {pipeline_mode = #tpu.pipeline_mode<synchronous>, transform_indices = @transform_3, window_bounds = array<i64: 128, 128>}, {pipeline_mode = #tpu.pipeline_mode<synchronous>, transform_indices = @transform_4, window_bounds = array<i64: 1, 128>}, {transform_indices = @transform_5, window_bounds = array<i64: 8, 128>}]} {
    %cst = arith.constant 0.000000e+00 : f32
    %0 = vector.broadcast %cst : f32 to vector<8x128xf32>
    %c0 = arith.constant 0 : index
    %c0_0 = arith.constant 0 : index
    %1 = vector.load %arg7[%c0, %c0_0] : memref<8x128xf32, #tpu.memory_space<vmem>>, vector<8x128xf32>
    tpu.vector_store %arg7[%c0, %c0_0], %0 {strides = array<i32>} : memref<8x128xf32, #tpu.memory_space<vmem>>, vector<8x128xf32>,
    %c0_i32 = arith.constant 0 : i32
    %c128_i32 = arith.constant 128 : i32
    %2 = arith.muli %c0_i32, %c128_i32 : i32
    %3 = tpu.assume_multiple %2, 128 : i32
    %c0_1 = arith.constant 0 : index
    %c0_2 = arith.constant 0 : index
    %4 = vector.load %arg1[%c0_1, %c0_2] : memref<8x128xf32, #tpu.memory_space<vmem>>, vector<8x128xf32>
    %c0_3 = arith.constant 0 : index
    %5 = arith.index_cast %3 : i32 to index
    %6 = vector.load %arg2[%c0_3, %5] : memref<128x128xf32, #tpu.memory_space<vmem>>, vector<128x128xf32>
    %cst_4 = arith.constant dense<0.000000e+00> : vector<8x128xf32>
    %7 = tpu.matmul %4, %6, %cst_4 {dimension_numbers = #tpu.dot_dimension_numbers<[1], [0], [0], [1], [0, 0, 1, 1], [], []>} : vector<8x128xf32>, vector<128x128xf32>, vector<8x128xf32> -> vector<8x128xf32>
    %c0_5 = arith.constant 0 : index
    %8 = arith.index_cast %3 : i32 to index
    %9 = vector.load %arg3[%c0_5, %8] : memref<1x128xf32, #tpu.memory_space<vmem>>, vector<1x128xf32>
    %10 = vector.broadcast %9 : vector<1x128xf32> to vector<8x128xf32>
    %11 = arith.addf %7, %10 : vector<8x128xf32>
    %12 = arith.negf %11 : vector<8x128xf32>
    %13 = math.exp %12 : vector<8x128xf32>
    %cst_6 = arith.constant 1.000000e+00 : f32
    %14 = vector.broadcast %cst_6 : f32 to vector<8x128xf32>
    %15 = arith.addf %14, %13 : vector<8x128xf32>
    %16 = arith.divf %14, %15 : vector<8x128xf32>
    %17 = arith.mulf %11, %16 : vector<8x128xf32>
    %18 = arith.index_cast %3 : i32 to index
    %c0_7 = arith.constant 0 : index
    %19 = vector.load %arg4[%18, %c0_7] : memref<128x128xf32, #tpu.memory_space<vmem>>, vector<128x128xf32>
    %c0_8 = arith.constant 0 : index
    %c0_9 = arith.constant 0 : index
    %20 = vector.load %arg7[%c0_8, %c0_9] : memref<8x128xf32, #tpu.memory_space<vmem>>, vector<8x128xf32>
    %cst_10 = arith.constant dense<0.000000e+00> : vector<8x128xf32>
    %21 = tpu.matmul %17, %19, %cst_10 {dimension_numbers = #tpu.dot_dimension_numbers<[1], [0], [0], [1], [0, 0, 1, 1], [], []>} : vector<8x128xf32>, vector<128x128xf32>, vector<8x128xf32> -> vector<8x128xf32>
    %22 = arith.addf %20, %21 : vector<8x128xf32>
    %c0_11 = arith.constant 0 : index
    %c0_12 = arith.constant 0 : index
    %23 = vector.load %arg7[%c0_11, %c0_12] : memref<8x128xf32, #tpu.memory_space<vmem>>, vector<8x128xf32>
    tpu.vector_store %arg7[%c0_11, %c0_12], %22 {strides = array<i32>} : memref<8x128xf32, #tpu.memory_space<vmem>>, vector<8x128xf32>,
    %c1_i32 = arith.constant 1 : i32
    %c0_13 = arith.constant 0 : index
    %c0_14 = arith.constant 0 : index
    %24 = vector.load %arg7[%c0_13, %c0_14] : memref<8x128xf32, #tpu.memory_space<vmem>>, vector<8x128xf32>
    %c0_15 = arith.constant 0 : index
    %c0_16 = arith.constant 0 : index
    %25 = vector.load %arg5[%c0_15, %c0_16] : memref<1x128xf32, #tpu.memory_space<vmem>>, vector<1x128xf32>
    %26 = vector.broadcast %25 : vector<1x128xf32> to vector<8x128xf32>
    %27 = arith.addf %24, %26 : vector<8x128xf32>
    %c0_17 = arith.constant 0 : index
    %c0_18 = arith.constant 0 : index
    %28 = vector.load %arg6[%c0_17, %c0_18] : memref<8x128xf32, #tpu.memory_space<vmem>>, vector<8x128xf32>
    tpu.vector_store %arg6[%c0_17, %c0_18], %27 {strides = array<i32>} : memref<8x128xf32, #tpu.memory_space<vmem>>, vector<8x128xf32>,
    return
  }
  func.func @transform_0(%arg0: i32) -> (i32, i32) {
    %c0_i32 = arith.constant 0 : i32
    %c0_i32_0 = arith.constant 0 : i32
    return %arg0, %c0_i32 : i32, i32
  }
  func.func @transform_1(%arg0: i32) -> (i32, i32) {
    %c0_i32 = arith.constant 0 : i32
    %c0_i32_0 = arith.constant 0 : i32
    %c0_i32_1 = arith.constant 0 : i32
    return %c0_i32, %c0_i32_0 : i32, i32
  }
  func.func @transform_2(%arg0: i32) -> (i32, i32) {
    %c0_i32 = arith.constant 0 : i32
    %c0_i32_0 = arith.constant 0 : i32
    %c0_i32_1 = arith.constant 0 : i32
    return %c0_i32, %c0_i32_0 : i32, i32
  }
  func.func @transform_3(%arg0: i32) -> (i32, i32) {
    %c0_i32 = arith.constant 0 : i32
    %c0_i32_0 = arith.constant 0 : i32
    %c0_i32_1 = arith.constant 0 : i32
    return %c0_i32, %c0_i32_0 : i32, i32
  }
  func.func @transform_4(%arg0: i32) -> (i32, i32) {
    %c0_i32 = arith.constant 0 : i32
    %c0_i32_0 = arith.constant 0 : i32
    %c0_i32_1 = arith.constant 0 : i32
    return %c0_i32, %c0_i32_0 : i32, i32
  }
  func.func @transform_5(%arg0: i32) -> (i32, i32) {
    %c0_i32 = arith.constant 0 : i32
    %c0_i32_0 = arith.constant 0 : i32
    return %arg0, %c0_i32 : i32, i32
  }
}

</mosaic_0001>

<bundles_post_ra>
// kernel: tpu_custom_call.1
= control target key start
LH: loop header
LB: loop body
LE: loop exit
PB: predicated region body
PF: predicated region fallthrough
CT: control target
= control target key end

     0   :  { %10 = vsyncpa [#allocation4], 0  ;;  %s1275_s0 = inlined_call_operand.hbm [shape: f32[16,128], index: 0, kind: input, shape index: {}]   ;;  %s1276_s1 = inlined_call_operand.hbm [shape: f32[128,128], index: 1, kind: input, shape index: {}]   ;;  %s1277_s2 = inlined_call_operand.vmem [shape: f32[1,128], index: 2, kind: input, shape index: {}]   ;;  %s1278_s3 = inlined_call_operand.hbm [shape: f32[128,128], index: 3, kind: input, shape index: {}]   ;;  %s1279_s4 = inlined_call_operand.vmem [shape: f32[1,128], index: 4, kind: input, shape index: {}]   ;;  %s1280_s5 = inlined_call_operand.hbm [shape: f32[16,128], index: 5, kind: output, shape index: {}]  }
   0x1   :  { %12 = vsyncpa [#allocation4 + $0x1], 0 }
   0x2   :  { %13 = vsyncpa [#allocation7], 0 }
   0x3   :  { %14 = vsyncpa [#allocation5], 0 }
   0x4   :  { %16 = vsyncpa [#allocation5 + $0x1], 0  ;;  %s1017_s18 = smov 0   ;;  %s1019_s19 = smov 0  }
   0x5   :  { %s1021_s20 = smov 0   ;;  %s1023_s21 = smov 0  }
   0x6 LB: > { %s1038_s22 = sadd.s32 4294967295, %s976_s21   ;;  %s573_s23 = sadd.s32 4294967294, %s976_s21   ;;  %s976_s21 = sphi %s1023_s21, %s1300_s21   ;;  %s972_s20 = sphi %s1021_s20, %s1299_s20   ;;  %s968_s19 = sphi %s1019_s19, %s1298_s19   ;;  %s964_s18 = sphi %s1017_s18, %s1297_s18  }
   0x7   : > { %p42_p0 = scmp.ne.s32.totalorder %s968_s19, %s964_s18  ;;  %p1281_p1 = scmp.eq.s32.totalorder %s1038_s22, 0 }
   0x8   : > { %p156_p3 = scmp.eq.s32.totalorder %s573_s23, 1  ;;  %p574_p5 = scmp.ge.s32.totalorder %s976_s21, 1 }
   0x9   : > { %p1047_p4 = por %p1281_p1, %p42_p0  ;;  %p163_p7 = scmp.lt.s32.totalorder %s976_s21, 3 }
   0xa   : > { %p1052_p6 = por %p156_p3, %p42_p0  ;;  %s978_s27 = smov [#allocation6]  }
   0xb   : > { %s1284_s24 = scalar_select %p1047_p4, 1, 0 }
   0xc   : > { %s1285_s25 = scalar_select %p1052_p6, 1, 0 }
   0xd   : > { %p1057_p8 = pnand %p574_p5, %p163_p7  ;;  %s175_s28 = sshll.u32 %s978_s27, 4  ;;  %s1061_s28 = int_to_ptr.vmem [resolvable:$true] %s175_s28 }
   0xe   : > { %s979_s30 = smov [#allocation8]   ;;  %s820_s9 = scalar_lea.hbm %s1276_s1, 2048 }
   0xf   : > { %p756_p9 = pneg %p1057_p8  ;;  %s191_s6 = sshll.u32 %s979_s30, 4  ;;  %s1072_s6 = int_to_ptr.vmem [resolvable:$true] %s191_s6 }
  0x10   : > { %p821_p12 = scmp.ne.s32.totalorder %s1276_s1, %s820_s9  ;;  %p827_p5 = scmp.lt.u32.totalorder %s820_s9, %s1276_s1 }
  0x11   : > { %p1068_p11 = pnand %p756_p9, %p1281_p1 }
  0x13   : > { %p822_p13 = pneg %p1068_p11 }
  0x15   : > { %p823_p0 = pnand %p822_p13, %p821_p12 }
  0x17   : > { %p824_p3 = pneg %p823_p0 }
  0x19   : > { %p829_p7 = pnand %p827_p5, %p824_p3 }
  0x1b   : > { %832 = shalt.err (!%p829_p7)
}
  0x1c   : > { %s833_s14 = scalar_lea.vmem %s1061_s28, 2048  ;;  %p841_p2 = scmp.lt.s32.totalorder %s1061_s28, %s1061_s28 }
  0x1d   : > { %p834_p9 = scmp.ne.s32.totalorder %s1061_s28, %s833_s14  ;;  %p842_p12 = scmp.lt.s32.totalorder %s833_s14, %s833_s14 }
  0x1f   : > { %p836_p10 = pnand %p834_p9, %p822_p13  ;;  %p843_p0 = por %p842_p12, %p841_p2 }
  0x21   : > { %p837_p1 = pneg %p836_p10 }
  0x23   : > { %p844_p6 = pnand %p843_p0, %p837_p1 }
  0x25   : > { %847 = shalt.err (!%p844_p6)
}
  0x26   : > { %s980_s15 = smov 128   ;;  %s981_s16 = smov 8  }
  0x27   : > { %759 = dma.hbm_to_vmem [thread:$0]  (!%p1068_p11), %s1276_s1, 2048, %s1061_s28, [#allocation7], %s980_s15, %s980_s15, %s981_s16  }
  0x28   : > { %s848_s7 = scalar_lea.hbm %s1278_s3, 2048 }
  0x29   : > { %p849_p2 = scmp.ne.s32.totalorder %s1278_s3, %s848_s7  ;;  %p855_p10 = scmp.lt.u32.totalorder %s848_s7, %s1278_s3 }
  0x2b   : > { %p851_p1 = pnand %p849_p2, %p822_p13 }
  0x2d   : > { %p852_p6 = pneg %p851_p1 }
  0x2f   : > { %p857_p3 = pnand %p855_p10, %p852_p6 }
  0x31   : > { %860 = shalt.err (!%p857_p3)
}
  0x32   : > { %s861_s28 = scalar_lea.vmem %s1072_s6, 2048  ;;  %p869_p12 = scmp.lt.s32.totalorder %s1072_s6, %s1072_s6 }
  0x33   : > { %p862_p5 = scmp.ne.s32.totalorder %s1072_s6, %s861_s28  ;;  %p870_p0 = scmp.lt.s32.totalorder %s861_s28, %s861_s28 }
  0x35   : > { %p864_p7 = pnand %p862_p5, %p822_p13  ;;  %p871_p2 = por %p870_p0, %p869_p12 }
  0x37   : > { %p865_p9 = pneg %p864_p7 }
  0x39   : > { %p872_p1 = pnand %p871_p2, %p865_p9 }
  0x3b   : > { %875 = shalt.err (!%p872_p1)
}
  0x3c   : > { %762 = dma.hbm_to_vmem [thread:$0]  (!%p1068_p11), %s1278_s3, 2048, %s1072_s6, [#allocation7], %s980_s15, %s980_s15, %s981_s16  }
  0x3d   : > { %s1127_s14 = sadd.s32 1, %s976_s21   ;;  %s29_s29 = sadd.s32 1, %s972_s20 }
  0x3e   : > { %s26_s17 = ssub.s32 %s976_s21, %s1127_s14  ;;  %p36_p13 = scmp.ne.s32.totalorder %s972_s20, %s968_s19 }
  0x3f   : > { %p27_p6 = scmp.eq.s32.totalorder %s26_s17, 0  ;;  %p37_p10 = scmp.eq.s32.totalorder %s976_s21, 0 }
  0x40   : > { %p1288_p3 = scmp.eq.s32.totalorder %s1038_s22, 1  ;;  %p773_p7 = scmp.lt.s32.totalorder %s976_s21, 2 }
  0x41   : > { %s1143_s27 = scalar_select %p27_p6, %s972_s20, %s29_s29  }
  0x42   : > { %p1137_p5 = por %p1288_p3, %p36_p13  ;;  %p38_p9 = por %p37_p10, %p36_p13 }
  0x43   : > { %s208_s30 = sand.u32 1, %s972_s20   ;;  %s579_s6 = sshll.u32 %s976_s21, 7 }
  0x44   : > { %s1289_s23 = scalar_select %p1137_p5, 1, 0 }
  0x45   : > { %s578_s7 = sshll.u32 %s208_s30, 3  ;;  %s1150_s8 = scalar_lea.hbm %s1275_s0, %s579_s6 }
  0x46   : > { %s212_s9 = scalar_lea.vmem [#allocation3], %s578_s7  ;;  %p1154_p11 = pnand %p773_p7, %p38_p9 }
  0x47   : > { %s219_s10 = sshll.u32 %s212_s9, 4  ;;  %s209_s28 = scalar_lea.sflag [#allocation4], %s208_s30  ;;  %s1152_s10 = int_to_ptr.vmem [resolvable:$true] %s219_s10 }
  0x48   : > { %s876_s12 = scalar_lea.hbm %s1150_s8, 128  ;;  %p878_p0 = pneg %p1154_p11 }
  0x49   : > { %p877_p12 = scmp.ne.s32.totalorder %s1150_s8, %s876_s12  ;;  %s881_s17 = scalar_lea.hbm %s1275_s0, 256 }
  0x4a   : > { %p882_p13 = scmp.lt.u32.totalorder %s1150_s8, %s1275_s0  ;;  %p883_p6 = scmp.lt.u32.totalorder %s881_s17, %s876_s12 }
  0x4b   : > { %p879_p2 = pnand %p878_p0, %p877_p12  ;;  %p885_p3 = scmp.lt.u32.totalorder %s876_s12, %s1150_s8 }
  0x4c   : > { %p884_p10 = por %p883_p6, %p882_p13 }
  0x4d   : > { %p880_p1 = pneg %p879_p2 }
  0x4e   : > { %p886_p7 = por %p885_p3, %p884_p10 }
  0x50   : > { %p887_p9 = pnand %p886_p7, %p880_p1 }
  0x52   : > { %890 = shalt.err (!%p887_p9)
}
  0x53   : > { %s891_s30 = scalar_lea.vmem %s1152_s10, 128  ;;  %s982_s15 = smov [#allocation3]  }
  0x54   : > { %p892_p12 = scmp.ne.s32.totalorder %s1152_s10, %s891_s30  ;;  %s896_s16 = sshll.u32 %s982_s15, 4  ;;  %s897_s16 = int_to_ptr.vmem [resolvable:$false] %s896_s16 }
  0x55   : > { %s898_s9 = scalar_lea.vmem %s897_s16, 256  ;;  %p899_p4 = scmp.lt.s32.totalorder %s1152_s10, %s897_s16 }
  0x56   : > { %p894_p2 = pnand %p892_p12, %p878_p0  ;;  %p900_p13 = scmp.lt.s32.totalorder %s898_s9, %s891_s30 }
  0x58   : > { %p895_p5 = pneg %p894_p2  ;;  %p901_p6 = por %p900_p13, %p899_p4 }
  0x5a   : > { %p902_p10 = pnand %p901_p6, %p895_p5 }
  0x5c   : > { %905 = shalt.err (!%p902_p10)
}
  0x5d   : > { %766 = dma.hbm_to_vmem [thread:$0]  (!%p1154_p11), %s1150_s8, 128, %s1152_s10, %s209_s28  }
  0x5e   : > { %228 = sbr.rel (%p1057_p8) target bundleno = 609 (0x261), region = 40  ;;  %s1186_s12 = sand.u32 (!%p1057_p8), 1, %s968_s19  }
  0x5f   : > { %s581_s13 = sshll.u32 (!%p1057_p8), %s1186_s12, 3  ;;  %s231_s29 = scalar_lea.sflag (!%p1057_p8), [#allocation4], %s1186_s12 }
  0x60   : > { %s1192_s17 = scalar_lea.vmem (!%p1057_p8), [#allocation3], %s581_s13  ;;  %p1291_p4 = scmp.ne.s32.totalorder (!%p1057_p8), %s1284_s24, 0 }
  0x65   : > { %951 = dma.done.wait (%p1291_p4), %s231_s29, 128  }
  0x66   : > { %953 = vsyncadd (%p1291_p4), %s231_s29, 4294967168  ;;  %p1292_p5 = scmp.eq.s32.totalorder %s1038_s22, 0 }
  0x68   : > { %955 = dma.done.wait (%p1292_p5), [#allocation7], 4096   ;;  %p1293_p8 = pmov %p1292_p5 }
  0x69   : > { %v983_v0 = vmov 0.0|0.0   ;;  %vm984_vm0 = vmmov 0   ;;  %v985_v1 = vmov 0.0   ;;  %v271_v2 = vld [vmem:[#allocation6] sm:$0xff]  ;;  %v272_v3 = vld [vmem:[#allocation6 + $0x8] sm:$0xff]  ;;  %v273_v4 = vld [vmem:[#allocation6 + $0x10] sm:$0xff] }
  0x6a   : > { %957 = vsyncadd (%p1293_p8), [#allocation7], 4294963200  ;;  %696 = vmatprep.subr.bf16.mxu0 %v983_v0  ;;  %658 = vmatprep.mubr.msk.f32.mxu0 %vm984_vm0, %v985_v1  ;;  %v697_v5 = vpack.c.bf16 %v272_v3, %v271_v2  ;;  %v274_v6 = vld [vmem:[#allocation6 + $0x18] sm:$0xff]  ;;  %v275_v8 = vld [vmem:[#allocation6 + $0x20] sm:$0xff]  ;;  %s589_s11 = sshll.u32 %s1038_s22, 7  ;;  %s268_s28 = scalar_lea.vmem [#allocation9], %s581_s13 }
  0x6b   : > { %720 = vmatprep.subr.bf16.mxu1 %v983_v0  ;;  %693 = vmatprep.mubr.msk.f32.mxu1 %vm984_vm0, %v985_v1  ;;  %v700_v7 = vpack.c.bf16 %v274_v6, %v273_v4  ;;  %v276_v9 = vld [vmem:[#allocation6 + $0x28] sm:$0xff]  ;;  %v277_v11 = vld [vmem:[#allocation6 + $0x30] sm:$0xff]  ;;  %v278_v12 = vld [vmem:[#allocation6 + $0x38] sm:$0xff]  ;;  %s484_s7 = sshll.u32 %s268_s28, 4  ;;  %s1231_s15 = scalar_lea.hbm %s1280_s5, %s589_s11  ;;  %s1233_s7 = int_to_ptr.vmem [resolvable:$true] %s484_s7 }
  0x6c   : > { %698 = vmatpush3.bf16.msra.mxu0 %v697_v5  ;;  %v703_v10 = vpack.c.bf16 %v276_v9, %v275_v8  ;;  %v706_v13 = vpack.c.bf16 %v278_v12, %v277_v11  ;;  %v279_v14 = vld [vmem:[#allocation6 + $0x40] sm:$0xff]  ;;  %v280_v15 = vld [vmem:[#allocation6 + $0x48] sm:$0xff]  ;;  %v281_v17 = vld [vmem:[#allocation6 + $0x50] sm:$0xff]  ;;  %s471_s16 = scalar_lea.sflag [#allocation5], %s1186_s12  ;;  %s906_s9 = scalar_lea.vmem %s1233_s7, 128 }
  0x6d   : > { %699 = vmatprep.subr.bf16.mxu0 %v983_v0  ;;  %v709_v16 = vpack.c.bf16 %v280_v15, %v279_v14  ;;  %v282_v18 = vld [vmem:[#allocation6 + $0x58] sm:$0xff]  ;;  %v283_v20 = vld [vmem:[#allocation6 + $0x60] sm:$0xff]  ;;  %v284_v21 = vld [vmem:[#allocation6 + $0x68] sm:$0xff]  ;;  %p907_p11 = scmp.ne.s32.totalorder %s1233_s7, %s906_s9  ;;  %p1294_p0 = scmp.ne.s32.totalorder %s1289_s23, 0 }
  0x6e   : > { %v712_v19 = vpack.c.bf16 %v282_v18, %v281_v17  ;;  %v715_v22 = vpack.c.bf16 %v284_v21, %v283_v20  ;;  %v285_v23 = vld [vmem:[#allocation6 + $0x70] sm:$0xff]  ;;  %v286_v24 = vld [vmem:[#allocation6 + $0x78] sm:$0xff]  ;;  %v371_v27 = vld [vmem:[#allocation8] sm:$0xff]  ;;  %s986_s22 = smov [#allocation9]  }
  0x6f   : > { %v718_v25 = vpack.c.bf16 %v286_v24, %v285_v23  ;;  %v270_v26 = vld [vmem:[%s1192_s17] sm:$0xff]  ;;  %v372_v28 = vld [vmem:[#allocation8 + $0x8] sm:$0xff]  ;;  %v375_v33 = vld [vmem:[#allocation8 + $0x20] sm:$0xff]  ;;  %p908_p1 = pnand %p907_p11, %p1294_p0  ;;  %s910_s13 = sshll.u32 %s986_s22, 4  ;;  %s911_s13 = int_to_ptr.vmem [resolvable:$false] %s910_s13 }
  0x70   : > { %701 = vmatpush3.bf16.msra.mxu0 %v700_v7  ;;  %v721_v29 = vpack.c.bf16 %v372_v28, %v371_v27  ;;  %v373_v30 = vld [vmem:[#allocation8 + $0x10] sm:$0xff]  ;;  %v374_v31 = vld [vmem:[#allocation8 + $0x18] sm:$0xff]  ;;  %v376_v34 = vld [vmem:[#allocation8 + $0x28] sm:$0xff]  ;;  %s912_s29 = scalar_lea.vmem %s911_s13, 256  ;;  %p913_p7 = scmp.lt.s32.totalorder %s1233_s7, %s911_s13 }
  0x71   : > { %702 = vmatprep.subr.bf16.mxu0 %v983_v0  ;;  %v724_v32 = vpack.c.bf16 %v374_v31, %v373_v30  ;;  %v727_v35 = vpack.c.bf16 %v376_v34, %v375_v33  ;;  %v377_v36 = vld [vmem:[#allocation8 + $0x30] sm:$0xff]  ;;  %v378_v37 = vld [vmem:[#allocation8 + $0x38] sm:$0xff]  ;;  %v379_v39 = vld [vmem:[#allocation8 + $0x40] sm:$0xff]  ;;  %p909_p3 = pneg %p908_p1  ;;  %p914_p9 = scmp.lt.s32.totalorder %s912_s29, %s906_s9 }
  0x72   : > { %722 = vmatpush3.bf16.msra.mxu1 %v721_v29  ;;  %v730_v38 = vpack.c.bf16 %v378_v37, %v377_v36  ;;  %v380_v40 = vld [vmem:[#allocation8 + $0x48] sm:$0xff]  ;;  %v381_v42 = vld [vmem:[#allocation8 + $0x50] sm:$0xff]  ;;  %v382_v43 = vld [vmem:[#allocation8 + $0x58] sm:$0xff] }
  0x73   : > { %723 = vmatprep.subr.bf16.mxu1 %v983_v0  ;;  %v733_v41 = vpack.c.bf16 %v380_v40, %v379_v39  ;;  %v736_v44 = vpack.c.bf16 %v382_v43, %v381_v42  ;;  %v383_v45 = vld [vmem:[#allocation8 + $0x60] sm:$0xff]  ;;  %v384_v46 = vld [vmem:[#allocation8 + $0x68] sm:$0xff]  ;;  %v385_v48 = vld [vmem:[#allocation8 + $0x70] sm:$0xff]  ;;  %p915_p12 = por %p914_p9, %p913_p7 }
  0x74   : > { %704 = vmatpush3.bf16.msra.mxu0 %v703_v10  ;;  %v739_v47 = vpack.c.bf16 %v384_v46, %v383_v45  ;;  %v386_v49 = vld [vmem:[#allocation8 + $0x78] sm:$0xff]  ;;  %v585_v51 = vld [vmem:[%s1277_s2] ss:$0 sm:$0xff] }
  0x75   : > { %705 = vmatprep.subr.bf16.mxu0 %v983_v0  ;;  %v742_v50 = vpack.c.bf16 %v386_v49, %v385_v48  ;;  %v587_v60 = vld [vmem:[%s1279_s4] ss:$0 sm:$0xff]  ;;  %p916_p2 = pnand %p915_p12, %p909_p3 }
  0x76   : > { %725 = vmatpush3.bf16.msra.mxu1 %v724_v32 }
  0x77   : > { %726 = vmatprep.subr.bf16.mxu1 %v983_v0 }
  0x78   : > { %707 = vmatpush3.bf16.msra.mxu0 %v706_v13 }
  0x79   : > { %708 = vmatprep.subr.bf16.mxu0 %v983_v0 }
  0x7a   : > { %728 = vmatpush3.bf16.msra.mxu1 %v727_v35 }
  0x7b   : > { %729 = vmatprep.subr.bf16.mxu1 %v983_v0 }
  0x7c   : > { %710 = vmatpush3.bf16.msra.mxu0 %v709_v16 }
  0x7d   : > { %711 = vmatprep.subr.bf16.mxu0 %v983_v0 }
  0x7e   : > { %731 = vmatpush3.bf16.msra.mxu1 %v730_v38 }
  0x7f   : > { %732 = vmatprep.subr.bf16.mxu1 %v983_v0 }
  0x80   : > { %713 = vmatpush3.bf16.msra.mxu0 %v712_v19 }
  0x81   : > { %714 = vmatprep.subr.bf16.mxu0 %v983_v0 }
  0x82   : > { %734 = vmatpush3.bf16.msra.mxu1 %v733_v41 }
  0x83   : > { %735 = vmatprep.subr.bf16.mxu1 %v983_v0 }
  0x84   : > { %716 = vmatpush3.bf16.msra.mxu0 %v715_v22 }
  0x85   : > { %717 = vmatprep.subr.bf16.mxu0 %v983_v0 }
  0x86   : > { %737 = vmatpush3.bf16.msra.mxu1 %v736_v44 }
  0x87   : > { %738 = vmatprep.subr.bf16.mxu1 %v983_v0 }
  0x88   : > { %719 = vmatpush3.bf16.msra.mxu0 %v718_v25 }
  0x8a   : > { %740 = vmatpush3.bf16.msra.mxu1 %v739_v47 }
  0x8b   : > { %659 = vmatmul.mubr.f32.vlgmr.msra.gmra.mrb[0].mxu0 %v270_v26  ;;  %741 = vmatprep.subr.bf16.mxu1 %v983_v0 }
  0x8e   : > { %743 = vmatpush3.bf16.msra.mxu1 %v742_v50 }
 0x15e   : > { %v360_v52 = vpop.f32.mrb[0].mxu0 }
 0x15f   : > { %v361_v53 = vadd.f32 %v585_v51, %v360_v52  ;;  %v660_v54 = vpop.f32.mrb[1].mxu0 }
 0x161   : > { %v586_v55 = vmul.f32 -1.442695, %v361_v53 }
 0x163   : > { %816 = vpow2.f32 %v586_v55 }
 0x16d   : > { %v817_v56 = vpop.eup %816 }
 0x16e   : > { %v367_v57 = vadd.f32 1.0, %v817_v56 }
 0x170   : > { %818 = vrcp.f32 %v367_v57 }
 0x17a   : > { %v819_v58 = vpop.eup %818 }
 0x17b   : > { %v370_v59 = vmul.f32 %v819_v58, %v361_v53 }
 0x17d   : > { %694 = vmatmul.mubr.f32.vlgmr.msra.gmra.mrb[0].mxu1 %v370_v59 }
 0x250   : > { %v454_v61 = vpop.f32.mrb[0].mxu1 }
 0x251   : > { %v468_v62 = vadd.f32 %v587_v60, %v454_v61  ;;  %v695_v63 = vpop.f32.mrb[1].mxu1 }
 0x253   : > { %469 = vst [vmem:[%s268_s28] sm:$0xff] %v468_v62 }
 0x254   : > { %919 = shalt.err (!%p916_p2)
}
 0x255   : > { %s920_s12 = scalar_lea.hbm %s1231_s15, 128  ;;  %s924_s26 = scalar_lea.hbm %s1280_s5, 256 }
 0x256   : > { %p921_p13 = scmp.ne.s32.totalorder %s1231_s15, %s920_s12  ;;  %p925_p4 = scmp.lt.u32.totalorder %s1231_s15, %s1280_s5 }
 0x257   : > { %p926_p5 = scmp.lt.u32.totalorder %s924_s26, %s920_s12  ;;  %p928_p11 = scmp.lt.u32.totalorder %s920_s12, %s1231_s15 }
 0x258   : > { %p922_p6 = pnand %p921_p13, %p1294_p0 }
 0x259   : > { %p927_p8 = por %p926_p5, %p925_p4 }
 0x25a   : > { %p923_p10 = pneg %p922_p6 }
 0x25b   : > { %p929_p1 = por %p928_p11, %p927_p8 }
 0x25d   : > { %p930_p3 = pnand %p929_p1, %p923_p10 }
 0x25f   : > { %933 = shalt.err (!%p930_p3)
}
 0x260   : > { %754 = dma.vmem_to_hbm [thread:$0]  (%p1294_p0), %s1233_s7, 128, %s1231_s15, %s471_s16  }
 0x261 PF: > { %s496_s11 = sand.u32 1, %s964_s18   ;;  %p1295_p7 = scmp.ne.s32.totalorder %s1285_s25, 0 }
 0x262   : > { %p1296_p9 = scmp.ge.s32.totalorder %s976_s21, 2  ;;  %s497_s28 = scalar_lea.sflag [#allocation5], %s496_s11 }
 0x264   : > { %p768_p12 = pnand %p1296_p9, %p1295_p7 }
 0x266   : > { %959 = dma.done.wait (!%p768_p12), %s497_s28, 128  }
 0x267   : > { %961 = vsyncadd (!%p768_p12), %s497_s28, 4294967168  ;;  %p19_p2 = scmp.ge.s32.totalorder %s1127_s14, 4   ;;  %s1297_s18 = smov %s968_s19 }
 0x268   : > { %s1298_s19 = smov %s972_s20  ;;  %s1299_s20 = smov %s1143_s27 }
 0x269   : > { %s1300_s21 = smov %s1127_s14  ;;  %21 = sbr.rel (!%p19_p2) target bundleno = 6 (0x6), region = 93 }
 0x270   :  { %502 = vsyncpa [#allocation4], 1 }
 0x271   :  { %504 = vsyncpa [#allocation4 + $0x1], 1 }
 0x272   :  { %505 = vsyncpa [#allocation7], 1 }
 0x273   :  { %506 = vsyncpa [#allocation5], 1 }
 0x274   :  { %508 = vsyncpa [#allocation5 + $0x1], 1 }

</bundles_post_ra>
